<compile_context>
chip_gen: v6e
topology: v6e:2x2x1
jax: 0.10.0
libtpu: 0.0.40
codegen_flags: <defaults>
</compile_context>

<pallas_src>
from functools import partial

import jax
import jax.numpy as jnp
import numpy as np
from jax.experimental import pallas as pl
from jax.experimental.pallas import tpu as pltpu

EPS = 1e-5  # PyTorch default eps for both InstanceNorm2d and BatchNorm2d

_VMEM_LIMIT_BYTES = 32 * 1024 * 1024   # explicit scoped-VMEM limit (safe on v5e/v6e/v7x)
_TILE_BUDGET_BYTES = 24 * 1024 * 1024  # budget for the 4 big double-buffered tiles


def _rownorm_kernel(x_ref, g_ref, b_ref, o_ref):
    """Normalize each row of a (tr, L) block over its last axis, with per-row affine."""
    x = x_ref[...].astype(jnp.float32)          # (tr, L)
    l = x.shape[-1]
    inv_l = jnp.float32(1.0 / l)

    mean = jnp.sum(x, axis=-1, keepdims=True) * inv_l          # (tr, 1)
    xc = x - mean
    var = jnp.sum(xc * xc, axis=-1, keepdims=True) * inv_l     # biased var (PyTorch norm)
    rstd = jax.lax.rsqrt(var + EPS)                            # (tr, 1)

    g = g_ref[...].astype(jnp.float32)          # (tr, 1), broadcast along lanes once
    b = b_ref[...].astype(jnp.float32)
    o_ref[...] = (xc * (rstd * g) + b).astype(o_ref.dtype)


def _pick_row_tile(rows, cols, dtype_bytes=4):
    """Largest row tile that (a) keeps 4 double-buffered (tr, cols) tiles under
    budget, (b) is a multiple of 8 sublanes (or equals the full row count), and
    (c) divides `rows` evenly."""
    max_rows = max(1, _TILE_BUDGET_BYTES // (4 * cols * dtype_bytes))
    if rows <= max_rows:
        return rows
    tr = (max_rows // 8) * 8
    while tr >= 8 and rows % tr != 0:
        tr -= 8
    if tr < 8:
        return rows  # fallback: single block (small-row / awkward-shape case)
    return tr


def _rownorm(x2d, gamma, beta):
    """x2d: (R, L).  Per-row normalization over axis=-1 with per-row affine."""
    rows, cols = x2d.shape
    tr = _pick_row_tile(rows, cols, jnp.dtype(x2d.dtype).itemsize)
    grid = (rows // tr,)

    return pl.pallas_call(
        _rownorm_kernel,
        out_shape=jax.ShapeDtypeStruct((rows, cols), x2d.dtype),
        grid=grid,
        in_specs=[
            pl.BlockSpec((tr, cols), lambda i: (i, 0)),
            pl.BlockSpec((tr, 1), lambda i: (i, 0)),
            pl.BlockSpec((tr, 1), lambda i: (i, 0)),
        ],
        out_specs=pl.BlockSpec((tr, cols), lambda i: (i, 0)),
        compiler_params=pltpu.CompilerParams(
            dimension_semantics=("parallel",),
            vmem_limit_bytes=_VMEM_LIMIT_BYTES,
        ),
    )(x2d, gamma.reshape(rows, 1), beta.reshape(rows, 1))


def ibn_forward(x, w_in, b_in, w_bn, b_bn):
    """x: (N, C, H, W) NCHW, float32.  Returns (N, C, H, W)."""
    n, c, h, w = x.shape
    half = c // 2
    half2 = c - half
    hw = h * w

    # ---- Instance-norm half: rows = (n, c) pairs, reduce over H*W -----------
    x_in = x[:, :half].reshape(n * half, hw)                    # lane-dense slab
    g_in = jnp.tile(w_in, n)                                    # row (n*half + c) -> w_in[c]
    be_in = jnp.tile(b_in, n)
    o_in = _rownorm(x_in, g_in, be_in).reshape(n, half, h, w)

    # ---- Batch-norm half: rows = channels, reduce over N*H*W ----------------
    x_bn = jnp.transpose(x[:, half:], (1, 0, 2, 3)).reshape(half2, n * hw)
    o_bn = _rownorm(x_bn, w_bn, b_bn).reshape(half2, n, h, w)
    o_bn = jnp.transpose(o_bn, (1, 0, 2, 3))

    return jnp.concatenate([o_in, o_bn], axis=1)


def ibn_reference(x, w_in, b_in, w_bn, b_bn):
    """Pure-JAX reference matching PyTorch IBN forward (training mode)."""
    n, c, h, w = x.shape
    half = c // 2
    x_in = x[:, :half]
    m1 = x_in.mean(axis=(2, 3), keepdims=True)
    v1 = ((x_in - m1) ** 2).mean(axis=(2, 3), keepdims=True)
    o1 = (x_in - m1) / jnp.sqrt(v1 + EPS) * w_in.reshape(1, half, 1, 1) + b_in.reshape(1, half, 1, 1)
    x_bn = x[:, half:]
    m2 = x_bn.mean(axis=(0, 2, 3), keepdims=True)
    v2 = ((x_bn - m2) ** 2).mean(axis=(0, 2, 3), keepdims=True)
    o2 = (x_bn - m2) / jnp.sqrt(v2 + EPS) * w_bn.reshape(1, -1, 1, 1) + b_bn.reshape(1, -1, 1, 1)
    return jnp.concatenate([o1, o2], axis=1)


if __name__ == "__main__":
    # Small shapes consistent with the module: planes=4 channels, 16x16 spatial.
    N, C, H, W = 2, 4, 16, 16
    half = C // 2
    half2 = C - half

    key = jax.random.PRNGKey(0)
    kx, k1, k2, k3, k4 = jax.random.split(key, 5)
    x = jax.random.normal(kx, (N, C, H, W), dtype=jnp.float32)

    # Deterministic affine parameters (PyTorch defaults are ones/zeros; use
    # small perturbations so the affine path is actually exercised).
    w_in = 1.0 + 0.1 * jax.random.normal(k1, (half,), dtype=jnp.float32)
    b_in = 0.1 * jax.random.normal(k2, (half,), dtype=jnp.float32)
    w_bn = 1.0 + 0.1 * jax.random.normal(k3, (half2,), dtype=jnp.float32)
    b_bn = 0.1 * jax.random.normal(k4, (half2,), dtype=jnp.float32)

    out = ibn_forward(x, w_in, b_in, w_bn, b_bn)
    jax.block_until_ready(out)

    ref = ibn_reference(x, w_in, b_in, w_bn, b_bn)
    np.testing.assert_allclose(np.asarray(out), np.asarray(ref), rtol=1e-5, atol=1e-5)

    print("KERNEL_OK")
</pallas_src>

<mosaic_0001>
module attributes {stable_mosaic.version = 11 : i64} {
  func.func @_rownorm_kernel(%arg0: i32, %arg1: memref<4x256xf32, #tpu.memory_space<vmem>>, %arg2: memref<4x1xf32, #tpu.memory_space<vmem>>, %arg3: memref<4x1xf32, #tpu.memory_space<vmem>>, %arg4: memref<4x256xf32, #tpu.memory_space<vmem>>) attributes {dimension_semantics = [#tpu.dimension_semantics<parallel>], iteration_bounds = array<i64: 1>, scalar_prefetch = 0 : i64, scratch_operands = 0 : i64, tpu.core_type = #tpu.core_type<tc>, window_params = [{transform_indices = @transform_0, window_bounds = array<i64: 4, 256>}, {transform_indices = @transform_1, window_bounds = array<i64: 4, 1>}, {transform_indices = @transform_2, window_bounds = array<i64: 4, 1>}, {transform_indices = @transform_3, window_bounds = array<i64: 4, 256>}]} {
    %c0 = arith.constant 0 : index
    %c0_0 = arith.constant 0 : index
    %0 = vector.load %arg1[%c0, %c0_0] : memref<4x256xf32, #tpu.memory_space<vmem>>, vector<4x256xf32>
    %cst = arith.constant dense<0.000000e+00> : vector<4xf32>
    %1 = vector.multi_reduction <add>, %0, %cst [1] : vector<4x256xf32> to vector<4xf32>
    %2 = vector.shape_cast %1 : vector<4xf32> to vector<4x1xf32>
    %cst_1 = arith.constant 3.906250e-03 : f32
    %3 = vector.broadcast %cst_1 : f32 to vector<4x1xf32>
    %4 = arith.mulf %2, %3 : vector<4x1xf32>
    %5 = vector.broadcast %4 : vector<4x1xf32> to vector<4x256xf32>
    %6 = arith.subf %0, %5 : vector<4x256xf32>
    %7 = arith.mulf %6, %6 : vector<4x256xf32>
    %cst_2 = arith.constant dense<0.000000e+00> : vector<4xf32>
    %8 = vector.multi_reduction <add>, %7, %cst_2 [1] : vector<4x256xf32> to vector<4xf32>
    %9 = vector.shape_cast %8 : vector<4xf32> to vector<4x1xf32>
    %cst_3 = arith.constant 3.906250e-03 : f32
    %10 = vector.broadcast %cst_3 : f32 to vector<4x1xf32>
    %11 = arith.mulf %9, %10 : vector<4x1xf32>
    %cst_4 = arith.constant 9.99999974E-6 : f32
    %12 = vector.broadcast %cst_4 : f32 to vector<4x1xf32>
    %13 = arith.addf %11, %12 : vector<4x1xf32>
    %14 = math.rsqrt %13 : vector<4x1xf32>
    %c0_5 = arith.constant 0 : index
    %c0_6 = arith.constant 0 : index
    %15 = vector.load %arg2[%c0_5, %c0_6] : memref<4x1xf32, #tpu.memory_space<vmem>>, vector<4x1xf32>
    %c0_7 = arith.constant 0 : index
    %c0_8 = arith.constant 0 : index
    %16 = vector.load %arg3[%c0_7, %c0_8] : memref<4x1xf32, #tpu.memory_space<vmem>>, vector<4x1xf32>
    %17 = arith.mulf %14, %15 : vector<4x1xf32>
    %18 = vector.broadcast %17 : vector<4x1xf32> to vector<4x256xf32>
    %19 = arith.mulf %6, %18 : vector<4x256xf32>
    %20 = vector.broadcast %16 : vector<4x1xf32> to vector<4x256xf32>
    %21 = arith.addf %19, %20 : vector<4x256xf32>
    %c0_9 = arith.constant 0 : index
    %c0_10 = arith.constant 0 : index
    %22 = vector.load %arg4[%c0_9, %c0_10] : memref<4x256xf32, #tpu.memory_space<vmem>>, vector<4x256xf32>
    tpu.vector_store %arg4[%c0_9, %c0_10], %21 {strides = array<i32>} : memref<4x256xf32, #tpu.memory_space<vmem>>, vector<4x256xf32>,
    return
  }
  func.func @transform_0(%arg0: i32) -> (i32, i32) {
    %c0_i32 = arith.constant 0 : i32
    %c0_i32_0 = arith.constant 0 : i32
    return %arg0, %c0_i32 : i32, i32
  }
  func.func @transform_1(%arg0: i32) -> (i32, i32) {
    %c0_i32 = arith.constant 0 : i32
    %c0_i32_0 = arith.constant 0 : i32
    return %arg0, %c0_i32 : i32, i32
  }
  func.func @transform_2(%arg0: i32) -> (i32, i32) {
    %c0_i32 = arith.constant 0 : i32
    %c0_i32_0 = arith.constant 0 : i32
    return %arg0, %c0_i32 : i32, i32
  }
  func.func @transform_3(%arg0: i32) -> (i32, i32) {
    %c0_i32 = arith.constant 0 : i32
    %c0_i32_0 = arith.constant 0 : i32
    return %arg0, %c0_i32 : i32, i32
  }
}

</mosaic_0001>

<bundles_post_ra>
// kernel: tpu_custom_call.1
= control target key start
LH: loop header
LB: loop body
LE: loop exit
PB: predicated region body
PF: predicated region fallthrough
CT: control target
= control target key end

     0   :  { %vm19_vm0 = vcmask 1043456   ;;  %s161_s0 = inlined_call_operand.vmem [shape: f32[4,256], index: 0, kind: input, shape index: {}]   ;;  %s162_s1 = inlined_call_operand.vmem [shape: f32[4,1], index: 1, kind: input, shape index: {}]   ;;  %s163_s2 = inlined_call_operand.vmem [shape: f32[4,1], index: 2, kind: input, shape index: {}]   ;;  %s164_s3 = inlined_call_operand.hbm [shape: f32[4,256], index: 3, kind: output, shape index: {}]  }
   0x1   :  { %v15_v0 = vld [vmem:[%s161_s0] sm:$0xff] }
   0x2   :  { %8 = vsyncpa [#allocation3], 0  ;;  %v17_v1 = vcombine.high %v15_v0, %v15_v0  ;;  %v20_v2 = vsel %vm19_vm0, %v15_v0, 0.0  ;;  %v122_v5 = vmov 839922192   ;;  %v30_v7 = vlaneseq  ;;  %s124_s17 = smov [#allocation2]  }
   0x3   :  { %v28_v6 = vunpack.c.l.s4 %v122_v5  ;;  %v123_v20 = vmov 0   ;;  %v48_v24 = vld [vmem:[%s162_s1] sm:$0xf]  ;;  %s84_s18 = sshll.u32 %s124_s17, 4  ;;  %s85_s18 = int_to_ptr.vmem [resolvable:$true] %s84_s18 }
   0x4   :  { %v21_v3 = vsel %vm19_vm0, %v17_v1, 0.0  ;;  %v31_v9 = vshrl.u32 %v30_v7, 7  ;;  %95 = vset.pattern.permute.xlu1 %v123_v20  ;;  %96 = vset.pattern.permute.xlu0 %v123_v20  ;;  %v49_v27 = vld [vmem:[%s163_s2] sm:$0xf]  ;;  %s100_s19 = scalar_lea.vmem %s85_s18, 128  ;;  %p105_p1 = scmp.lt.s32.totalorder %s85_s18, %s85_s18 }
   0x5   :  { %v22_v4 = vadd.f32 %v21_v3, %v20_v2  ;;  %v29_v8 = vunpack.c.0.s8 %v28_v6  ;;  %p101_p0 = scmp.ne.s32.totalorder %s85_s18, %s100_s19  ;;  %p106_p2 = scmp.lt.s32.totalorder %s100_s19, %s100_s19 }
   0x7   :  { %23 = vadd.xlane.f32.xlu0 %v22_v4  ;;  %v32_v10 = vsub.s32 %v29_v8, %v31_v9  ;;  %p107_p3 = por %p106_p2, %p105_p1 }
   0x9   :  { %p108_p4 = pnand %p107_p3, %p101_p0 }
  0x90   :  { %v24_v11 = vpop.xlane.xlu0 %23 }
  0x91   :  { %v25_v12 = vmul.f32 0.00390625, %v24_v11 }
  0x93   :  { %v33_v13 = vrot.slane %v25_v12, %v32_v10 }
  0x95   :  { %v35_v14 = vsub.f32 %v15_v0, %v33_v13 }
  0x97   :  { %v36_v15 = vmul.f32 %v35_v14, %v35_v14 }
  0x99   :  { %v38_v16 = vcombine.high %v36_v15, %v36_v15  ;;  %v40_v17 = vsel %vm19_vm0, %v36_v15, 0.0 }
  0x9b   :  { %v41_v18 = vsel %vm19_vm0, %v38_v16, 0.0 }
  0x9c   :  { %v42_v19 = vadd.f32 %v41_v18, %v40_v17 }
  0x9e   :  { %43 = vadd.xlane.f32.xlu0 %v42_v19 }
 0x127   :  { %v44_v21 = vpop.xlane.xlu0 %43 }
 0x128   :  { %v45_v22 = vmul.f32 0.00390625, %v44_v21 }
 0x12a   :  { %v46_v23 = vadd.f32 1e-05, %v45_v22 }
 0x12c   :  { %98 = vrsqrt.f32 %v46_v23 }
 0x139   :  { %v99_v25 = vpop.eup %98 }
 0x13a   :  { %v50_v26 = vmul.f32 %v99_v25, %v48_v24 }
 0x13c   :  { %53 = vperm.xlu1 %95, %v50_v26  }
 0x140   :  { %66 = vperm.xlu1 %95, %v49_v27  }
 0x1b7   :  { %v54_v28 = vpop.permute.xlu1 %53 }
 0x1b8   :  { %v61_v29 = vrot.slane %v54_v28, %v32_v10 }
 0x1ba   :  { %v63_v31 = vmul.f32 %v61_v29, %v35_v14 }
 0x1bb   :  { %v67_v30 = vpop.permute.xlu1 %66 }
 0x1bc   :  { %v74_v32 = vrot.slane %v67_v30, %v32_v10 }
 0x1be   :  { %v76_v33 = vadd.f32 %v74_v32, %v63_v31 }
 0x1c0   :  { %77 = vst [vmem:[#allocation2] sm:$0xff] %v76_v33 }
 0x1c1   :  { %111 = shalt.err (!%p108_p4)
}
 0x1c2   :  { %87 = dma.vmem_to_hbm [thread:$0]  %s85_s18, 128, %s164_s3, [#allocation3]  }
 0x1c3   :  { %120 = dma.done.wait [#allocation3], 128  }
 0x1c4   :  { %121 = vsyncadd [#allocation3], 4294967168 }
 0x1c5   :  { %91 = vsyncpa [#allocation3], 1 }

</bundles_post_ra>
